<compile_context>
chip_gen: v7x
topology: tpu7x:2x2x1
jax: 0.10.0
libtpu: 0.0.40
codegen_flags: <defaults>
</compile_context>

<pallas_src>
import functools

import jax
import jax.numpy as jnp
from jax.experimental import pallas as pl
from jax.experimental.pallas import tpu as pltpu


def _layernorm_kernel(x_ref, w_ref, b_ref, o_ref, *, eps, h_true):
    # x_ref: (tile_rows, H_pad) in VMEM; w_ref/b_ref: (1, H_pad) f32, resident.
    x = x_ref[...].astype(jnp.float32)
    h_pad = x.shape[-1]
    inv_n = jnp.float32(1.0 / h_true)

    # Pass 1: mean.  Padded columns (if any) are zero in the input, so they
    # contribute nothing to the sum; divide by the *true* hidden size.
    mean = jnp.sum(x, axis=-1, keepdims=True) * inv_n

    # Pass 2: variance over (x - mean)^2 -- PyTorch-matching two-pass math.
    diff = x - mean
    if h_pad != h_true:
        # Padded columns hold (0 - mean); mask them out of the variance.
        col = jax.lax.broadcasted_iota(jnp.int32, (1, h_pad), 1)
        diff_sq = jnp.where(col < h_true, diff * diff, 0.0)
    else:
        diff_sq = diff * diff
    var = jnp.sum(diff_sq, axis=-1, keepdims=True) * inv_n
    inv = jax.lax.rsqrt(var + eps)

    w = w_ref[...]  # already f32
    b = b_ref[...]
    o_ref[...] = (diff * inv * w + b).astype(o_ref.dtype)


def _round_up(v, m):
    return ((v + m - 1) // m) * m


def layer_norm(x, weight, bias, eps=1e-12, vmem_limit_bytes=None):
    """LayerNorm over the last axis of x, matching the PyTorch module."""
    orig_shape = x.shape
    H = orig_shape[-1]
    x2 = x.reshape(-1, H)
    R = x2.shape[0]

    in_bytes = jnp.dtype(x.dtype).itemsize
    out_bytes = in_bytes
    # Sublane quantum: 8 rows for 32-bit, 16 for 16-bit, 32 for 8-bit dtypes.
    q = 8 if in_bytes >= 4 else (16 if in_bytes == 2 else 32)

    # ---- Device-kind aware defaults. ----
    try:
        kind = jax.devices()[0].device_kind.lower()
    except Exception:
        kind = ""
    is_v7 = "v7" in kind
    is_v5 = "v5" in kind

    # ---- VMEM budget (v7x has 64 MiB/TC, v5e/v6e have 128 MiB). ----
    try:
        info = pltpu.get_tpu_info()
        phys_vmem = int(getattr(info, "vmem_capacity_bytes"))
    except Exception:
        phys_vmem = (64 if is_v7 else 128) * 1024 * 1024
    if vmem_limit_bytes is None:
        vmem_limit_bytes = min(int(phys_vmem * 3 // 4), 100 * 1024 * 1024)

    # ---- Lane-dense hidden dim: pad H up to a multiple of 128 if needed. ----
    H_pad = _round_up(H, 128)
    if H_pad != H:
        x2 = jnp.pad(x2, ((0, 0), (0, H_pad - H)))
        w_arr = jnp.pad(weight.astype(jnp.float32), (0, H_pad - H))
        b_arr = jnp.pad(bias.astype(jnp.float32), (0, H_pad - H))
    else:
        w_arr = weight.astype(jnp.float32)
        b_arr = bias.astype(jnp.float32)
    w2 = w_arr.reshape(1, H_pad)
    b2 = b_arr.reshape(1, H_pad)

    # ---- Tile sizing. ----
    # Double-buffered input + output blocks plus ~12 B/elem of f32 temporaries
    # (upcast x, diff, pre-downcast result) created in the kernel.
    bytes_per_row = H_pad * (2 * in_bytes + 2 * out_bytes + 12)
    budget = int(vmem_limit_bytes * 0.8)
    tile_max = max(q, (budget // bytes_per_row) // q * q)
    # Roofline plateaus by ~512-1024 rows; bigger tiles only add VMEM pressure.
    tile_max = min(tile_max, 512 if is_v5 else 1024)

    # Target >= 8 grid steps so double-buffering reaches steady state and the
    # parallel axis keeps both v7x TensorCores streaming; floor ~256 rows
    # (clamped to R) so per-step overhead stays amortized.
    tile_target = _round_up(pl.cdiv(R, 8), q)
    tile_floor = min(256, _round_up(R, q))
    tile = max(tile_target, tile_floor)
    tile = min(tile, tile_max)
    tile = max(tile, q)

    grid = (pl.cdiv(R, tile),)

    kernel = functools.partial(_layernorm_kernel, eps=eps, h_true=H)

    out = pl.pallas_call(
        kernel,
        out_shape=jax.ShapeDtypeStruct((R, H_pad), x.dtype),
        grid_spec=pltpu.PrefetchScalarGridSpec(
            num_scalar_prefetch=0,
            grid=grid,
            in_specs=[
                pl.BlockSpec((tile, H_pad), lambda i: (i, 0)),
                pl.BlockSpec((1, H_pad), lambda i: (0, 0)),
                pl.BlockSpec((1, H_pad), lambda i: (0, 0)),
            ],
            out_specs=pl.BlockSpec((tile, H_pad), lambda i: (i, 0)),
        ),
        compiler_params=pltpu.CompilerParams(
            dimension_semantics=("parallel",),
            vmem_limit_bytes=vmem_limit_bytes,
        ),
    )(x2, w2, b2)

    if H_pad != H:
        out = out[:, :H]
    return out.reshape(orig_shape)


if __name__ == "__main__":
    key = jax.random.PRNGKey(0)
    batch, seq, hidden = 2, 8, 32
    x = jax.random.normal(key, (batch, seq, hidden), dtype=jnp.float32)

    # Deterministic parameter init matching nn.Parameter(torch.ones/zeros(hidden))
    weight = jnp.ones((hidden,), dtype=jnp.float32)
    bias = jnp.zeros((hidden,), dtype=jnp.float32)

    out = layer_norm(x, weight, bias, eps=1e-12)
    out = jax.block_until_ready(out)

    # Reference check in plain JAX (same math as the PyTorch module).
    u = x.mean(-1, keepdims=True)
    s = ((x - u) ** 2).mean(-1, keepdims=True)
    ref = weight * ((x - u) / jnp.sqrt(s + 1e-12)) + bias
    assert out.shape == x.shape
    assert jnp.allclose(out, ref, atol=1e-5, rtol=1e-5), "mismatch vs reference"

    print("KERNEL_OK")
</pallas_src>

<mosaic_0001>
module attributes {stable_mosaic.version = 11 : i64} {
  func.func @_layernorm_kernel(%arg0: i32, %arg1: memref<16x128xf32, #tpu.memory_space<vmem>>, %arg2: memref<1x128xf32, #tpu.memory_space<vmem>>, %arg3: memref<1x128xf32, #tpu.memory_space<vmem>>, %arg4: memref<16x128xf32, #tpu.memory_space<vmem>>) attributes {dimension_semantics = [#tpu.dimension_semantics<parallel>], iteration_bounds = array<i64: 1>, scalar_prefetch = 0 : i64, scratch_operands = 0 : i64, tpu.core_type = #tpu.core_type<tc>, window_params = [{transform_indices = @transform_0, window_bounds = array<i64: 16, 128>}, {pipeline_mode = #tpu.pipeline_mode<synchronous>, transform_indices = @transform_1, window_bounds = array<i64: 1, 128>}, {pipeline_mode = #tpu.pipeline_mode<synchronous>, transform_indices = @transform_2, window_bounds = array<i64: 1, 128>}, {transform_indices = @transform_3, window_bounds = array<i64: 16, 128>}]} {
    %c0 = arith.constant 0 : index
    %c0_0 = arith.constant 0 : index
    %0 = vector.load %arg1[%c0, %c0_0] : memref<16x128xf32, #tpu.memory_space<vmem>>, vector<16x128xf32>
    %cst = arith.constant dense<0.000000e+00> : vector<16xf32>
    %1 = vector.multi_reduction <add>, %0, %cst [1] : vector<16x128xf32> to vector<16xf32>
    %2 = vector.shape_cast %1 : vector<16xf32> to vector<16x1xf32>
    %cst_1 = arith.constant 3.125000e-02 : f32
    %3 = vector.broadcast %cst_1 : f32 to vector<16x1xf32>
    %4 = arith.mulf %2, %3 : vector<16x1xf32>
    %5 = vector.broadcast %4 : vector<16x1xf32> to vector<16x128xf32>
    %6 = arith.subf %0, %5 : vector<16x128xf32>
    %7 = tpu.iota {dimensions = array<i32: 1>} : vector<1x128xi32>
    %c32_i32 = arith.constant 32 : i32
    %8 = vector.broadcast %c32_i32 : i32 to vector<1x128xi32>
    %9 = arith.cmpi slt, %7, %8 : vector<1x128xi32>
    %10 = arith.mulf %6, %6 : vector<16x128xf32>
    %cst_2 = arith.constant 0.000000e+00 : f32
    %11 = vector.shape_cast %9 : vector<1x128xi1> to vector<1x128xi1>
    %12 = vector.broadcast %11 : vector<1x128xi1> to vector<16x128xi1>
    %13 = vector.broadcast %cst_2 : f32 to vector<16x128xf32>
    %14 = arith.select %12, %10, %13 : vector<16x128xi1>, vector<16x128xf32>
    %cst_3 = arith.constant dense<0.000000e+00> : vector<16xf32>
    %15 = vector.multi_reduction <add>, %14, %cst_3 [1] : vector<16x128xf32> to vector<16xf32>
    %16 = vector.shape_cast %15 : vector<16xf32> to vector<16x1xf32>
    %cst_4 = arith.constant 3.125000e-02 : f32
    %17 = vector.broadcast %cst_4 : f32 to vector<16x1xf32>
    %18 = arith.mulf %16, %17 : vector<16x1xf32>
    %cst_5 = arith.constant 9.99999996E-13 : f32
    %19 = vector.broadcast %cst_5 : f32 to vector<16x1xf32>
    %20 = arith.addf %18, %19 : vector<16x1xf32>
    %21 = math.rsqrt %20 : vector<16x1xf32>
    %c0_6 = arith.constant 0 : index
    %c0_7 = arith.constant 0 : index
    %22 = vector.load %arg2[%c0_6, %c0_7] : memref<1x128xf32, #tpu.memory_space<vmem>>, vector<1x128xf32>
    %c0_8 = arith.constant 0 : index
    %c0_9 = arith.constant 0 : index
    %23 = vector.load %arg3[%c0_8, %c0_9] : memref<1x128xf32, #tpu.memory_space<vmem>>, vector<1x128xf32>
    %24 = vector.broadcast %21 : vector<16x1xf32> to vector<16x128xf32>
    %25 = arith.mulf %6, %24 : vector<16x128xf32>
    %26 = vector.broadcast %22 : vector<1x128xf32> to vector<16x128xf32>
    %27 = arith.mulf %25, %26 : vector<16x128xf32>
    %28 = vector.broadcast %23 : vector<1x128xf32> to vector<16x128xf32>
    %29 = arith.addf %27, %28 : vector<16x128xf32>
    %c0_10 = arith.constant 0 : index
    %c0_11 = arith.constant 0 : index
    %30 = vector.load %arg4[%c0_10, %c0_11] : memref<16x128xf32, #tpu.memory_space<vmem>>, vector<16x128xf32>
    tpu.vector_store %arg4[%c0_10, %c0_11], %29 {strides = array<i32>} : memref<16x128xf32, #tpu.memory_space<vmem>>, vector<16x128xf32>,
    return
  }
  func.func @transform_0(%arg0: i32) -> (i32, i32) {
    %c0_i32 = arith.constant 0 : i32
    %c0_i32_0 = arith.constant 0 : i32
    return %arg0, %c0_i32 : i32, i32
  }
  func.func @transform_1(%arg0: i32) -> (i32, i32) {
    %c0_i32 = arith.constant 0 : i32
    %c0_i32_0 = arith.constant 0 : i32
    %c0_i32_1 = arith.constant 0 : i32
    return %c0_i32, %c0_i32_0 : i32, i32
  }
  func.func @transform_2(%arg0: i32) -> (i32, i32) {
    %c0_i32 = arith.constant 0 : i32
    %c0_i32_0 = arith.constant 0 : i32
    %c0_i32_1 = arith.constant 0 : i32
    return %c0_i32, %c0_i32_0 : i32, i32
  }
  func.func @transform_3(%arg0: i32) -> (i32, i32) {
    %c0_i32 = arith.constant 0 : i32
    %c0_i32_0 = arith.constant 0 : i32
    return %arg0, %c0_i32 : i32, i32
  }
}

</mosaic_0001>

<bundles_post_ra>
// kernel: tpu_custom_call.1
= control target key start
LH: loop header
LB: loop body
LE: loop exit
PB: predicated region body
PF: predicated region fallthrough
CT: control target
= control target key end

     0   :  { %8 = vsyncpa [#allocation3], 0  ;;  %s314_s0 = inlined_call_operand.hbm [shape: f32[16,128], index: 0, kind: input, shape index: {}]   ;;  %s315_s1 = inlined_call_operand.hbm [shape: f32[1,128], index: 1, kind: input, shape index: {}]   ;;  %s316_s2 = inlined_call_operand.hbm [shape: f32[1,128], index: 2, kind: input, shape index: {}]   ;;  %s317_s3 = inlined_call_operand.hbm [shape: f32[16,128], index: 3, kind: output, shape index: {}]  }
   0x1   :  { %9 = vsyncpa [#allocation6], 0 }
   0x2   :  { %10 = vsyncpa [#allocation4], 0  ;;  %s227_s12 = smov [#allocation5]   ;;  %s228_s14 = smov [#allocation2]  }
   0x3   :  { %s29_s13 = sshll.u32 %s227_s12, 4  ;;  %s16_s15 = sshll.u32 %s228_s14, 4  ;;  %s30_s13 = int_to_ptr.vmem [resolvable:$true] %s29_s13  ;;  %s253_s15 = int_to_ptr.vmem [resolvable:$true] %s16_s15 }
   0x4   :  { %s133_s18 = scalar_lea.hbm %s315_s1, 16 }
   0x5   :  { %p134_p0 = scmp.ne.s32.totalorder %s315_s1, %s133_s18  ;;  %p137_p1 = scmp.lt.u32.totalorder %s133_s18, %s315_s1 }
   0x7   :  { %p139_p2 = pnand %p137_p1, %p134_p0 }
   0x9   :  { %142 = shalt.err (!%p139_p2)
}
   0xa   :  { %s143_s23 = scalar_lea.vmem %s30_s13, 16  ;;  %s147_s24 = scalar_lea.vmem %s30_s13, 32 }
   0xb   :  { %p144_p3 = scmp.ne.s32.totalorder %s30_s13, %s143_s23  ;;  %p148_p4 = scmp.lt.s32.totalorder %s30_s13, %s30_s13 }
   0xc   :  { %p149_p5 = scmp.lt.s32.totalorder %s147_s24, %s143_s23 }
   0xe   :  { %p150_p6 = por %p149_p5, %p148_p4 }
  0x10   :  { %p151_p7 = pnand %p150_p6, %p144_p3 }
  0x12   :  { %154 = shalt.err (!%p151_p7)
}
  0x13   :  { %32 = dma.hbm_to_vmem [thread:$0]  %s315_s1, 16, %s30_s13, [#allocation6]  }
  0x14   :  { %s155_s29 = scalar_lea.hbm %s314_s0, 256 }
  0x15   :  { %p156_p8 = scmp.ne.s32.totalorder %s314_s0, %s155_s29  ;;  %p159_p9 = scmp.lt.u32.totalorder %s155_s29, %s314_s0 }
  0x17   :  { %p161_p10 = pnand %p159_p9, %p156_p8 }
  0x19   :  { %164 = shalt.err (!%p161_p10)
}
  0x1a   :  { %s165_s7 = scalar_lea.vmem %s253_s15, 256  ;;  %p170_p12 = scmp.lt.s32.totalorder %s253_s15, %s253_s15 }
  0x1b   :  { %p166_p11 = scmp.ne.s32.totalorder %s253_s15, %s165_s7  ;;  %p171_p13 = scmp.lt.s32.totalorder %s165_s7, %s165_s7 }
  0x1d   :  { %p172_p0 = por %p171_p13, %p170_p12 }
  0x1f   :  { %p173_p1 = pnand %p172_p0, %p166_p11 }
  0x21   :  { %176 = shalt.err (!%p173_p1)
}
  0x22   :  { %s229_s1 = smov 128   ;;  %s230_s8 = smov 8  }
  0x23   :  { %22 = dma.hbm_to_vmem [thread:$0]  %s314_s0, 256, %s253_s15, [#allocation3], %s229_s1, %s229_s1, %s230_s8  }
  0x24   :  { %s231_s11 = smov [#allocation7]   ;;  %s177_s16 = scalar_lea.hbm %s316_s2, 16 }
  0x25   :  { %s39_s12 = sshll.u32 %s231_s11, 4  ;;  %p178_p2 = scmp.ne.s32.totalorder %s316_s2, %s177_s16  ;;  %s40_s12 = int_to_ptr.vmem [resolvable:$true] %s39_s12 }
  0x26   :  { %p181_p3 = scmp.lt.u32.totalorder %s177_s16, %s316_s2 }
  0x28   :  { %p183_p4 = pnand %p181_p3, %p178_p2 }
  0x2a   :  { %186 = shalt.err (!%p183_p4)
}
  0x2b   :  { %s187_s21 = scalar_lea.vmem %s40_s12, 16  ;;  %s191_s0 = scalar_lea.vmem %s40_s12, 32 }
  0x2c   :  { %p188_p5 = scmp.ne.s32.totalorder %s40_s12, %s187_s21  ;;  %p192_p6 = scmp.lt.s32.totalorder %s40_s12, %s40_s12 }
  0x2d   :  { %p193_p7 = scmp.lt.s32.totalorder %s191_s0, %s187_s21 }
  0x2f   :  { %p194_p8 = por %p193_p7, %p192_p6 }
  0x31   :  { %p195_p9 = pnand %p194_p8, %p188_p5 }
  0x33   :  { %198 = shalt.err (!%p195_p9)
}
  0x34   :  { %42 = dma.hbm_to_vmem [thread:$0]  %s316_s2, 16, %s40_s12, [#allocation6]  }
  0x35   :  { %221 = dma.done.wait [#allocation3], 256  }
  0x36   :  { %222 = vsyncadd [#allocation3], 4294967040 }
  0x37   :  { %223 = dma.done.wait [#allocation6], 32  }
  0x38   :  { %224 = vsyncadd [#allocation6], 4294967264  ;;  %v52_v0 = vld [vmem:[#allocation2] sm:$0xff]  ;;  %v53_v1 = vld [vmem:[#allocation2 + $0x8] sm:$0xff]  ;;  %v62_v2 = vlaneseq  ;;  %s232_s2 = smov [#allocation8]  }
  0x39   :  { %54 = vadd.xlane.f32.xlu0 %v52_v0  ;;  %v121_v21 = vld [vmem:[#allocation5] ss:$0 sm:$0xff]  ;;  %v122_v23 = vld [vmem:[#allocation7] ss:$0 sm:$0xff]  ;;  %s108_s23 = sshll.u32 %s232_s2, 4  ;;  %s109_s23 = int_to_ptr.vmem [resolvable:$true] %s108_s23 }
  0x3a   :  { %v63_v4 = vand.u32 127, %v62_v2  ;;  %s199_s24 = scalar_lea.vmem %s109_s23, 256  ;;  %p204_p11 = scmp.lt.s32.totalorder %s109_s23, %s109_s23 }
  0x3b   :  { %p200_p10 = scmp.ne.s32.totalorder %s109_s23, %s199_s24  ;;  %p205_p12 = scmp.lt.s32.totalorder %s199_s24, %s199_s24 }
  0x3c   :  { %vm64_vm0 = vcmp.lt.s32.totalorder %v63_v4, 32 }
  0x3d   :  { %56 = vadd.xlane.f32.xlu0 %v53_v1  ;;  %p206_p13 = por %p205_p12, %p204_p11 }
  0x3f   :  { %p207_p0 = pnand %p206_p13, %p200_p10 }
  0xc6   :  { %v55_v3 = vpop.xlane.xlu0 %54 }
  0xc7   :  { %v58_v5 = vmul.f32 0.03125, %v55_v3 }
  0xc9   :  { %v60_v6 = vsub.f32 %v52_v0, %v58_v5 }
  0xca   :  { %v57_v7 = vpop.xlane.xlu0 %56 }
  0xcb   :  { %v59_v8 = vmul.f32 0.03125, %v57_v7  ;;  %v65_v9 = vmul.f32 %v60_v6, %v60_v6 }
  0xcd   :  { %v61_v10 = vsub.f32 %v53_v1, %v59_v8  ;;  %v69_v11 = vsel %vm64_vm0, %v65_v9, 0.0 }
  0xce   :  { %71 = vadd.xlane.f32.xlu1 %v69_v11 }
  0xcf   :  { %v66_v12 = vmul.f32 %v61_v10, %v61_v10 }
  0xd1   :  { %v70_v13 = vsel %vm64_vm0, %v66_v12, 0.0 }
  0xd2   :  { %73 = vadd.xlane.f32.xlu1 %v70_v13 }
 0x15b   :  { %v72_v14 = vpop.xlane.xlu1 %71 }
 0x15c   :  { %v75_v15 = vmul.f32 0.03125, %v72_v14 }
 0x15e   :  { %v77_v16 = vadd.f32 1e-12, %v75_v15 }
 0x15f   :  { %v74_v17 = vpop.xlane.xlu1 %73 }
 0x160   :  { %129 = vrsqrt.f32 %v77_v16  ;;  %v76_v18 = vmul.f32 0.03125, %v74_v17 }
 0x162   :  { %v78_v19 = vadd.f32 1e-12, %v76_v18 }
 0x164   :  { %131 = vrsqrt.f32 %v78_v19 }
 0x16a   :  { %v130_v20 = vpop.eup %129 }
 0x16b   :  { %v83_v22 = vmul.f32 %v130_v20, %v60_v6 }
 0x16d   :  { %v91_v24 = vmul.f32 %v121_v21, %v83_v22 }
 0x16e   :  { %v132_v25 = vpop.eup %131 }
 0x16f   :  { %v84_v26 = vmul.f32 %v132_v25, %v61_v10  ;;  %v99_v27 = vadd.f32 %v122_v23, %v91_v24 }
 0x171   :  { %v92_v28 = vmul.f32 %v121_v21, %v84_v26  ;;  %101 = vst [vmem:[#allocation8] sm:$0xff] %v99_v27 }
 0x173   :  { %v100_v29 = vadd.f32 %v122_v23, %v92_v28 }
 0x175   :  { %102 = vst [vmem:[#allocation8 + $0x8] sm:$0xff] %v100_v29 }
 0x176   :  { %210 = shalt.err (!%p207_p0)
}
 0x177   :  { %s211_s27 = scalar_lea.hbm %s317_s3, 256 }
 0x178   :  { %p212_p1 = scmp.ne.s32.totalorder %s317_s3, %s211_s27  ;;  %p215_p2 = scmp.lt.u32.totalorder %s211_s27, %s317_s3 }
 0x17a   :  { %p217_p3 = pnand %p215_p2, %p212_p1 }
 0x17c   :  { %220 = shalt.err (!%p217_p3)
}
 0x17d   :  { %114 = dma.vmem_to_hbm [thread:$0]  %s109_s23, 256, %s317_s3, [#allocation4], %s229_s1, %s229_s1, %s230_s8  }
 0x17e   :  { %225 = dma.done.wait [#allocation4], 256  }
 0x17f   :  { %226 = vsyncadd [#allocation4], 4294967040 }
 0x180   :  { %118 = vsyncpa [#allocation3], 1 }
 0x181   :  { %119 = vsyncpa [#allocation6], 1 }
 0x182   :  { %120 = vsyncpa [#allocation4], 1 }

</bundles_post_ra>
